<compile_context>
chip_gen: v5e
topology: v5e:2x2
jax: 0.10.0
libtpu: 0.0.40
codegen_flags: <defaults>
</compile_context>

<pallas_src>
import functools

import jax
import jax.numpy as jnp
from jax.experimental import pallas as pl
from jax.experimental.pallas import tpu as pltpu

_BN_EPS = 1e-5
_MAX_BLOCK_ROWS = 2048          # amortizes ~0.35us/grid-step without giant tiles
_LANE = 128


def _round_up(x, m):
    return (x + m - 1) // m * m


def _cdiv(a, b):
    return (a + b - 1) // b


def _vmem_limit_bytes():
    """Generation-aware scoped-VMEM limit: ~3/4 of physical VMEM, capped at
    100 MiB (v5e/v6e: 128 MiB physical -> 96 MiB; v7x: 64 MiB -> 48 MiB)."""
    try:
        phys = int(pltpu.get_tpu_info().vmem_capacity_bytes)
    except Exception:           # fallback: assume worst case (v7x, 64 MiB)
        phys = 64 * 1024 * 1024
    return min(phys * 3 // 4, 100 * 1024 * 1024)


def _pick_tile_oh(oh, wp, khc, ocp, kw, vmem_limit):
    """Largest output-row block (in image rows) whose double-buffered pipeline
    blocks plus in-kernel f32 temporaries fit comfortably in the VMEM limit."""
    khc_l = _round_up(khc, _LANE)           # VMEM lane padding
    per_row = (2 * khc_l * 2                # xk block, bf16, 2 pipeline buffers
               + 2 * ocp * 2                # conv block, bf16, 2 pipeline buffers
               + 2 * _LANE * 4              # validity column, f32, lane-padded
               + 2 * khc_l * 4              # f32 upcast slab + rolled copy
               + 2 * ocp * 4)               # f32 accumulator + masked accumulator
    fixed = 2 * (kw * _round_up(khc, 16) * ocp * 2) + 2 * (8 * ocp * 4)
    budget = (vmem_limit * 3) // 5 - fixed  # leave headroom for the compiler
    max_rows = min(_MAX_BLOCK_ROWS, max(wp, budget // per_row))
    return max(1, min(oh, max_rows // wp))


# ---------------------------------------------------------------------------
# Pass 1: conv as KW shifted MXU matmuls (bf16 in, f32 acc) + BN partial stats.
# ---------------------------------------------------------------------------
def _conv_stats_kernel(xk_ref, w_ref, valid_ref, conv_ref, stats_ref):
    """One (batch, row-block) grid step.

    xk_ref:    (R, KH*C)       bf16  KH-stacked activation rows (R = tile_oh*Wp)
    w_ref:     (KW, KH*C, OCp) bf16  conv weights (bias dropped: cancels in BN)
    valid_ref: (R, 1)          f32   1.0 on real (oh, ow<OW) positions, else 0.0
    conv_ref:  (R, OCp)        bf16  conv output block
    stats_ref: (2, OCp)        f32   [sum; sum-of-squares] over valid rows
    """
    r = xk_ref.shape[0]
    kw = w_ref.shape[0]

    # Upcast once to f32: the KW shift is a sublane roll, which is native for
    # 32-bit elements (sidesteps packed-bf16 sublane-rotation corner cases).
    xf = xk_ref[...].astype(jnp.float32)

    acc = None
    for j in range(kw):
        # Row q of the block reads row q + j (flat oh*Wp + ow axis). Wrapped /
        # cross-row garbage lands only in ow >= OW columns, which are masked out
        # of the statistics below and sliced off in the wrapper epilogue.
        xs = xf if j == 0 else pltpu.roll(xf, shift=r - j, axis=0)
        part = jnp.dot(xs.astype(jnp.bfloat16), w_ref[j],
                       preferred_element_type=jnp.float32)
        acc = part if acc is None else acc + part

    conv_ref[...] = acc.astype(conv_ref.dtype)

    # Partial BN statistics over valid positions only; single store of the whole
    # 2-row stats block (no zero fill, no sub-row masked stores).
    cm = acc * valid_ref[...]
    stats_ref[...] = jnp.concatenate(
        [jnp.sum(cm, axis=0, keepdims=True),
         jnp.sum(cm * cm, axis=0, keepdims=True)], axis=0)


@functools.partial(jax.jit, static_argnames=("kernel_size", "stride", "padding"))
def conv_batch2d_forward(x, weight, bias, gamma, beta,
                         kernel_size=(3, 3), stride=(1, 1), padding=(0, 0)):
    """x: (N, C_in, H, W) f32 NCHW; weight: (C_out, C_in, KH, KW); returns NCHW f32.

    `bias` is accepted but unused: a per-channel conv bias is cancelled exactly
    by training-mode BatchNorm (it shifts the batch mean by the same amount).
    """
    n, cin, h, w = x.shape
    oc, cin_w, kh, kw = weight.shape
    assert cin_w == cin
    assert (kh, kw) == tuple(kernel_size)
    # TODO(synk): only stride (1,1) (the module default) is handled by the fused
    #             flat-row formulation; strided conv would need a strided mapping.
    assert tuple(stride) == (1, 1)
    ph, pw = padding
    if ph or pw:
        x = jnp.pad(x, ((0, 0), (0, 0), (ph, ph), (pw, pw)))
        h, w = h + 2 * ph, w + 2 * pw
    oh, ow = h - kh + 1, w - kw + 1

    khc = kh * cin
    # Lane-dense output channels: 128-padded; 256-padded past one MXU tile so a
    # single matmul pass fills the 256-wide v6e/v7x MXUs.
    ocp = _round_up(oc, 128) if oc <= 128 else _round_up(oc, 256)
    wp = _round_up(w, 8)                    # keeps row blocks 8-sublane aligned

    vmem_limit = _vmem_limit_bytes()
    tile_oh = _pick_tile_oh(oh, wp, khc, ocp, kw, vmem_limit)
    nb = _cdiv(oh, tile_oh)
    oh_pad = nb * tile_oh
    r = tile_oh * wp                        # flat rows per block (multiple of 8)
    hq = oh_pad * wp                        # flat rows per image

    # --- Activation slab: NCHW f32 -> NHWC bf16 with the KH window stacked into
    # channels. Only the 3 vertical shifts are materialized (~1.5x input bytes,
    # bf16); no 9x im2col patch matrix, no K padding.
    xh = x.astype(jnp.bfloat16).transpose(0, 2, 3, 1)            # (N, H, W, C)
    xh = jnp.pad(xh, ((0, 0), (0, 0), (0, wp - w), (0, 0)))      # (N, H, Wp, C)
    xk = jnp.concatenate([xh[:, i:i + oh] for i in range(kh)], axis=-1)
    xk = jnp.pad(xk, ((0, 0), (0, oh_pad - oh), (0, 0), (0, 0)))
    xk = xk.reshape(n, hq, khc)                                  # (N, Hq, KH*C)

    # --- Weights: (OC, C, KH, KW) -> (KW, KH*C, OCp) bf16, (i, c) channel order
    # matching the xk stacking. Conv bias is intentionally dropped.
    w2 = weight.transpose(3, 2, 1, 0).reshape(kw, khc, oc)
    w2 = jnp.pad(w2, ((0, 0), (0, 0), (0, ocp - oc))).astype(jnp.bfloat16)

    # --- Per-flat-row validity: keeps oh padding and ow >= OW garbage columns
    # out of the batch statistics.
    valid = ((jnp.arange(oh_pad) < oh)[:, None]
             & (jnp.arange(wp) < ow)[None, :]).astype(jnp.float32).reshape(hq, 1)

    cost = pl.CostEstimate(
        flops=2 * n * hq * kw * khc * ocp,
        transcendentals=0,
        bytes_accessed=(n * hq * khc * 2 + kw * khc * ocp * 2 + hq * 4
                        + n * hq * ocp * 2 + n * nb * 2 * ocp * 4),
    )

    conv, stats = pl.pallas_call(
        _conv_stats_kernel,
        out_shape=(
            jax.ShapeDtypeStruct((n, hq, ocp), jnp.bfloat16),    # bf16 conv interm.
            jax.ShapeDtypeStruct((n, nb, 2, ocp), jnp.float32),  # per-block partials
        ),
        grid=(n, nb),
        in_specs=[
            pl.BlockSpec((None, r, khc), lambda b, t: (b, t, 0)),
            # Constant-index weight block; tiny here (KW*KH*C x OCp bf16), so the
            # default double-buffering costs only a few KiB of VMEM.
            pl.BlockSpec((kw, khc, ocp), lambda b, t: (0, 0, 0)),
            pl.BlockSpec((r, 1), lambda b, t: (t, 0)),
        ],
        out_specs=(
            pl.BlockSpec((None, r, ocp), lambda b, t: (b, t, 0)),
            pl.BlockSpec((None, None, 2, ocp), lambda b, t: (b, t, 0, 0)),
        ),
        compiler_params=pltpu.CompilerParams(
            dimension_semantics=("parallel", "parallel"),
            vmem_limit_bytes=vmem_limit),
        cost_estimate=cost,
    )(xk, w2, valid)

    # --- Global batch statistics (tiny cross-block reduce, f32, bias-free so the
    # E[x^2]-E[x]^2 form is well conditioned). Biased variance = training-mode BN.
    count = jnp.float32(n * oh * ow)
    tot = jnp.sum(stats[:, :, 0, :], axis=(0, 1))
    tot_sq = jnp.sum(stats[:, :, 1, :], axis=(0, 1))
    mean = tot / count
    var = jnp.maximum(tot_sq / count - mean * mean, 0.0)
    scale = jnp.pad(gamma.astype(jnp.float32), (0, ocp - oc)) * jax.lax.rsqrt(var + _BN_EPS)
    shift = jnp.pad(beta.astype(jnp.float32), (0, ocp - oc)) - mean * scale

    # --- Epilogue: per-channel FMA + ReLU + slice + NCHW transpose, left to XLA
    # so it fuses into one HBM pass over the bf16 conv intermediate.
    y = jnp.maximum(conv.astype(jnp.float32) * scale + shift, 0.0)
    y = y.reshape(n, oh_pad, wp, ocp)[:, :oh, :ow, :oc]          # (N, OH, OW, OC)
    return y.transpose(0, 3, 1, 2)                               # NCHW


def init_params(key, in_channels, out_channels, kernel_size=(3, 3)):
    """Deterministic init mimicking nn.Conv2d / nn.BatchNorm2d defaults."""
    kh, kw = kernel_size
    fan_in = in_channels * kh * kw
    bound = 1.0 / jnp.sqrt(jnp.float32(fan_in))
    k_w, k_b = jax.random.split(key)
    weight = jax.random.uniform(k_w, (out_channels, in_channels, kh, kw),
                                jnp.float32, -bound, bound)
    bias = jax.random.uniform(k_b, (out_channels,), jnp.float32, -bound, bound)
    gamma = jnp.ones((out_channels,), jnp.float32)
    beta = jnp.zeros((out_channels,), jnp.float32)
    return weight, bias, gamma, beta


def _reference(x, weight, bias, gamma, beta, stride, padding):
    """Pure-JAX reference: Conv2d (+bias) -> training-mode BatchNorm2d -> ReLU."""
    z = jax.lax.conv_general_dilated(
        x, weight, window_strides=stride,
        padding=[(padding[0], padding[0]), (padding[1], padding[1])],
        dimension_numbers=("NCHW", "OIHW", "NCHW"))
    z = z + bias[None, :, None, None]
    mean = jnp.mean(z, axis=(0, 2, 3), keepdims=True)
    var = jnp.var(z, axis=(0, 2, 3), keepdims=True)      # biased (training) var
    y = (z - mean) * jax.lax.rsqrt(var + _BN_EPS)
    y = y * gamma[None, :, None, None] + beta[None, :, None, None]
    return jnp.maximum(y, 0.0)


if __name__ == "__main__":
    key = jax.random.PRNGKey(0)
    k_x, k_p = jax.random.split(key)

    N, C_IN, H, W = 2, 4, 16, 16
    C_OUT = 8
    KSIZE, STRIDE, PAD = (3, 3), (1, 1), (0, 0)

    x = jax.random.normal(k_x, (N, C_IN, H, W), jnp.float32)
    weight, bias, gamma, beta = init_params(k_p, C_IN, C_OUT, KSIZE)

    out = conv_batch2d_forward(x, weight, bias, gamma, beta,
                               kernel_size=KSIZE, stride=STRIDE, padding=PAD)
    out = jax.block_until_ready(out)
    assert out.shape == (N, C_OUT, H - 2, W - 2), out.shape
    assert bool(jnp.all(out >= 0.0))          # ReLU output is non-negative

    ref = _reference(x, weight, bias, gamma, beta, STRIDE, PAD)
    err = float(jnp.max(jnp.abs(out - ref)))
    assert err < 8e-2, f"max |out - ref| = {err}"   # bf16 matmul tolerance
    print("KERNEL_OK")
</pallas_src>

<mosaic_0001>
module attributes {stable_mosaic.version = 11 : i64} {
  func.func @_conv_stats_kernel(%arg0: i32, %arg1: i32, %arg2: memref<1x224x12xbf16, #tpu.memory_space<vmem>>, %arg3: memref<3x12x128xbf16, #tpu.memory_space<vmem>>, %arg4: memref<224x1xf32, #tpu.memory_space<vmem>>, %arg5: memref<1x224x128xbf16, #tpu.memory_space<vmem>>, %arg6: memref<1x1x2x128xf32, #tpu.memory_space<vmem>>) attributes {dimension_semantics = [#tpu.dimension_semantics<parallel>, #tpu.dimension_semantics<parallel>], iteration_bounds = array<i64: 2, 1>, scalar_prefetch = 0 : i64, scratch_operands = 0 : i64, tpu.core_type = #tpu.core_type<tc>, window_params = [{transform_indices = @transform_0, window_bounds = array<i64: 1, 224, 12>}, {pipeline_mode = #tpu.pipeline_mode<synchronous>, transform_indices = @transform_1, window_bounds = array<i64: 3, 12, 128>}, {transform_indices = @transform_2, window_bounds = array<i64: 224, 1>}, {transform_indices = @transform_3, window_bounds = array<i64: 1, 224, 128>}, {transform_indices = @transform_4, window_bounds = array<i64: 1, 1, 2, 128>}]} {
    %c0 = arith.constant 0 : index
    %c0_0 = arith.constant 0 : index
    %c0_1 = arith.constant 0 : index
    %0 = vector.load %arg2[%c0, %c0_0, %c0_1] : memref<1x224x12xbf16, #tpu.memory_space<vmem>>, vector<1x224x12xbf16>
    %1 = vector.shape_cast %0 : vector<1x224x12xbf16> to vector<224x12xbf16>
    %2 = arith.extf %1 : vector<224x12xbf16> to vector<224x12xf32>
    %3 = arith.truncf %2 : vector<224x12xf32> to vector<224x12xbf16>
    %c0_2 = arith.constant 0 : index
    %c0_3 = arith.constant 0 : index
    %c0_4 = arith.constant 0 : index
    %4 = vector.load %arg3[%c0_2, %c0_3, %c0_4] : memref<3x12x128xbf16, #tpu.memory_space<vmem>>, vector<1x12x128xbf16>
    %5 = vector.shape_cast %4 : vector<1x12x128xbf16> to vector<12x128xbf16>
    %cst = arith.constant dense<0.000000e+00> : vector<224x128xf32>
    %6 = tpu.matmul %3, %5, %cst {dimension_numbers = #tpu.dot_dimension_numbers<[1], [0], [0], [1], [0, 0, 1, 1], [], []>} : vector<224x12xbf16>, vector<12x128xbf16>, vector<224x128xf32> -> vector<224x128xf32>
    %c223_i32 = arith.constant 223 : i32
    %7 = tpu.dynamic_rotate %2 by %c223_i32 dim 0 : vector<224x12xf32>, i32 -> vector<224x12xf32>
    %8 = arith.truncf %7 : vector<224x12xf32> to vector<224x12xbf16>
    %c1 = arith.constant 1 : index
    %c0_5 = arith.constant 0 : index
    %c0_6 = arith.constant 0 : index
    %9 = vector.load %arg3[%c1, %c0_5, %c0_6] : memref<3x12x128xbf16, #tpu.memory_space<vmem>>, vector<1x12x128xbf16>
    %10 = vector.shape_cast %9 : vector<1x12x128xbf16> to vector<12x128xbf16>
    %cst_7 = arith.constant dense<0.000000e+00> : vector<224x128xf32>
    %11 = tpu.matmul %8, %10, %cst_7 {dimension_numbers = #tpu.dot_dimension_numbers<[1], [0], [0], [1], [0, 0, 1, 1], [], []>} : vector<224x12xbf16>, vector<12x128xbf16>, vector<224x128xf32> -> vector<224x128xf32>
    %12 = arith.addf %6, %11 : vector<224x128xf32>
    %c222_i32 = arith.constant 222 : i32
    %13 = tpu.dynamic_rotate %2 by %c222_i32 dim 0 : vector<224x12xf32>, i32 -> vector<224x12xf32>
    %14 = arith.truncf %13 : vector<224x12xf32> to vector<224x12xbf16>
    %c2 = arith.constant 2 : index
    %c0_8 = arith.constant 0 : index
    %c0_9 = arith.constant 0 : index
    %15 = vector.load %arg3[%c2, %c0_8, %c0_9] : memref<3x12x128xbf16, #tpu.memory_space<vmem>>, vector<1x12x128xbf16>
    %16 = vector.shape_cast %15 : vector<1x12x128xbf16> to vector<12x128xbf16>
    %cst_10 = arith.constant dense<0.000000e+00> : vector<224x128xf32>
    %17 = tpu.matmul %14, %16, %cst_10 {dimension_numbers = #tpu.dot_dimension_numbers<[1], [0], [0], [1], [0, 0, 1, 1], [], []>} : vector<224x12xbf16>, vector<12x128xbf16>, vector<224x128xf32> -> vector<224x128xf32>
    %18 = arith.addf %12, %17 : vector<224x128xf32>
    %19 = arith.truncf %18 : vector<224x128xf32> to vector<224x128xbf16>
    %c0_11 = arith.constant 0 : index
    %c0_12 = arith.constant 0 : index
    %c0_13 = arith.constant 0 : index
    %20 = vector.load %arg5[%c0_11, %c0_12, %c0_13] : memref<1x224x128xbf16, #tpu.memory_space<vmem>>, vector<1x224x128xbf16>
    %21 = vector.shape_cast %20 : vector<1x224x128xbf16> to vector<224x128xbf16>
    %22 = vector.shape_cast %19 : vector<224x128xbf16> to vector<1x224x128xbf16>
    tpu.vector_store %arg5[%c0_11, %c0_12, %c0_13], %22 {strides = array<i32>} : memref<1x224x128xbf16, #tpu.memory_space<vmem>>, vector<1x224x128xbf16>,
    %c0_14 = arith.constant 0 : index
    %c0_15 = arith.constant 0 : index
    %23 = vector.load %arg4[%c0_14, %c0_15] : memref<224x1xf32, #tpu.memory_space<vmem>>, vector<224x1xf32>
    %24 = vector.broadcast %23 : vector<224x1xf32> to vector<224x128xf32>
    %25 = arith.mulf %18, %24 : vector<224x128xf32>
    %cst_16 = arith.constant dense<0.000000e+00> : vector<128xf32>
    %26 = vector.multi_reduction <add>, %25, %cst_16 [0] : vector<224x128xf32> to vector<128xf32>
    %27 = vector.shape_cast %26 : vector<128xf32> to vector<1x128xf32>
    %28 = arith.mulf %25, %25 : vector<224x128xf32>
    %cst_17 = arith.constant dense<0.000000e+00> : vector<128xf32>
    %29 = vector.multi_reduction <add>, %28, %cst_17 [0] : vector<224x128xf32> to vector<128xf32>
    %30 = vector.shape_cast %29 : vector<128xf32> to vector<1x128xf32>
    %31 = tpu.concatenate %27, %30 in 0 : vector<1x128xf32>, vector<1x128xf32> -> vector<2x128xf32>
    %c0_18 = arith.constant 0 : index
    %c0_19 = arith.constant 0 : index
    %c0_20 = arith.constant 0 : index
    %c0_21 = arith.constant 0 : index
    %32 = vector.load %arg6[%c0_18, %c0_19, %c0_20, %c0_21] : memref<1x1x2x128xf32, #tpu.memory_space<vmem>>, vector<1x1x2x128xf32>
    %33 = vector.shape_cast %32 : vector<1x1x2x128xf32> to vector<2x128xf32>
    %34 = vector.shape_cast %31 : vector<2x128xf32> to vector<1x1x2x128xf32>
    tpu.vector_store %arg6[%c0_18, %c0_19, %c0_20, %c0_21], %34 {strides = array<i32>} : memref<1x1x2x128xf32, #tpu.memory_space<vmem>>, vector<1x1x2x128xf32>,
    return
  }
  func.func @transform_0(%arg0: i32, %arg1: i32) -> (i32, i32, i32) {
    %c0_i32 = arith.constant 0 : i32
    %c0_i32_0 = arith.constant 0 : i32
    return %arg0, %arg1, %c0_i32 : i32, i32, i32
  }
  func.func @transform_1(%arg0: i32, %arg1: i32) -> (i32, i32, i32) {
    %c0_i32 = arith.constant 0 : i32
    %c0_i32_0 = arith.constant 0 : i32
    %c0_i32_1 = arith.constant 0 : i32
    %c0_i32_2 = arith.constant 0 : i32
    return %c0_i32, %c0_i32_0, %c0_i32_1 : i32, i32, i32
  }
  func.func @transform_2(%arg0: i32, %arg1: i32) -> (i32, i32) {
    %c0_i32 = arith.constant 0 : i32
    %c0_i32_0 = arith.constant 0 : i32
    return %arg1, %c0_i32 : i32, i32
  }
  func.func @transform_3(%arg0: i32, %arg1: i32) -> (i32, i32, i32) {
    %c0_i32 = arith.constant 0 : i32
    %c0_i32_0 = arith.constant 0 : i32
    return %arg0, %arg1, %c0_i32 : i32, i32, i32
  }
  func.func @transform_4(%arg0: i32, %arg1: i32) -> (i32, i32, i32, i32) {
    %c0_i32 = arith.constant 0 : i32
    %c0_i32_0 = arith.constant 0 : i32
    %c0_i32_1 = arith.constant 0 : i32
    return %arg0, %arg1, %c0_i32, %c0_i32_0 : i32, i32, i32, i32
  }
}

</mosaic_0001>

<bundles_post_ra>
// kernel: conv_batch2d_forward.1
= control target key start
LH: loop header
LB: loop body
LE: loop exit
PB: predicated region body
PF: predicated region fallthrough
CT: control target
= control target key end

     0   :  { %s1773_s15 = smov 0   ;;  %s1775_s16 = smov 0   ;;  %s2241_s0 = inlined_call_operand.vmem [shape: bf16[2,224,12], index: 0, kind: input, shape index: {}]   ;;  %s2242_s1 = inlined_call_operand.vmem [shape: bf16[3,12,128], index: 1, kind: input, shape index: {}]   ;;  %s2243_s2 = inlined_call_operand.vmem [shape: f32[224,1], index: 2, kind: input, shape index: {}]   ;;  %s2244_s3 = inlined_call_operand.vmem [shape: bf16[2,224,128], index: 3, kind: output, shape index: {0}]   ;;  %s2245_s4 = inlined_call_operand.vmem [shape: f32[2,1,2,128], index: 4, kind: output, shape index: {1}]  }
   0x1   :  { %s1777_s17 = smov 0  }
   0x2 LB: > { %s27_s18 = sadd.s32 1, %s1741_s16  ;;  %p1471_p0 = scmp.ge.s32.totalorder %s1745_s17, 1  ;;  %s1745_s17 = sphi %s1777_s17, %s15_s17   ;;  %s1741_s16 = sphi %s1775_s16, %s2247_s16   ;;  %s1737_s15 = sphi %s1773_s15, %s2246_s15  }
   0x3   : > { %p29_p1 = scmp.ge.s32.totalorder %s27_s18, 2  ;;  %p199_p2 = scmp.lt.s32.totalorder %s1745_s17, 3 }
   0x5   : > { %s2249_s18 = smov (%p29_p1, %s27_s18), 0  ;;  %p200_p3 = pnand %p1471_p0, %p199_p2 }
   0x6   : > { %p246_p4 = scmp.lt.s32.totalorder (!%p200_p3), %s1737_s15, 1 }
   0x7   : > { %203 = sbr.rel (%p200_p3) target bundleno = 361 (0x169), region = 32 }
   0xc   : > { %v1553_v0 = vld [vmem:[%s2242_s1] sm:$0xf]  ;;  %v1605_v1 = vld [vmem:[%s2242_s1] sm:$0x30]  ;;  %vm461_vm0 = vcmask 1045504   ;;  %v365_v5 = vlaneseq  ;;  %s2251_s15 = smov (!%p246_p4, %s1737_s15), 1 }
   0xd   : > { %v1554_v2 = vor.u32 %v1605_v1, %v1553_v0  ;;  %v1479_v3 = vld [vmem:[%s2242_s1 + $0x8] sm:$0xf]  ;;  %v1606_v4 = vld [vmem:[%s2242_s1 + $0x8] sm:$0x30]  ;;  %v1573_v7 = vld [vmem:[%s2242_s1 + $0x10] sm:$0xf] }
   0xe   : > { %v1480_v6 = vor.u32 %v1606_v4, %v1479_v3  ;;  %v1607_v8 = vld [vmem:[%s2242_s1 + $0x10] sm:$0x30]  ;;  %v1030_v11 = vld [vmem:[%s2243_s2] sm:$0xff]  ;;  %s1694_s7 = smul.u32 112, %s2251_s15  ;;  %v1747_v13 = vmov 0   ;;  %v1818_v15 = vshrl.u32 %v365_v5, 7 }
   0xf   : > { %v662_v9 = vsel %vm461_vm0, %v1554_v2, 0  ;;  %v1574_v10 = vor.u32 %v1607_v8, %v1573_v7  ;;  %1720 = vset.pattern.permute.xlu0 %v1747_v13  ;;  %vm418_vm1 = vcmask 97280   ;;  %1721 = vset.pattern.permute.xlu1 %v1747_v13  ;;  %v1031_v34 = vld [vmem:[%s2243_s2 + $0x8] sm:$0xff]  ;;  %v1032_v52 = vld [vmem:[%s2243_s2 + $0x10] sm:$0xff]  ;;  %v1033_v0 = vld [vmem:[%s2243_s2 + $0x18] sm:$0xff]  ;;  %vm1320_vm4 = vcmask 1040384  }
  0x10   : > { %671 = vmatpush.bf16.msra.mxu1 %v662_v9  ;;  %v463_v12 = vsel %vm461_vm0, %v1480_v6, 0  ;;  %s1825_s10 = scalar_lea.vmem %s2241_s0, %s1694_s7  ;;  %1060 = vperm.xlu0 %1720, %v1030_v11   ;;  %vm367_vm2 = vcmp.lt.s32.totalorder %v1818_v15, 7  ;;  %vm771_vm3 = vcmp.lt.s32.totalorder %v1818_v15, 6  ;;  %s2142_s5 = scalar_lea.vmem %s2244_s3, %s1694_s7 }
  0x11   : > { %472 = vmatpush.bf16.msra.mxu0 %v463_v12  ;;  %1691 = vmatpush.bf16.msra.mxu3 %v463_v12  ;;  %v865_v14 = vsel %vm461_vm0, %v1574_v10, 0  ;;  %v1591_v16 = vld [vmem:[%s1825_s10] sm:$0xff]  ;;  %v281_v18 = vld [vmem:[%s1825_s10 + $0x8] sm:$0xff]   ;;  %v1831_v22 = vld [vmem:[%s1825_s10 + $0x58] sm:$0xff]   ;;  %s1474_s7 = sshll.u32 %s2251_s15, 1 }
  0x12   : > { %874 = vmatpush.bf16.msra.mxu2 %v865_v14  ;;  %v279_v17 = vld [vmem:[%s1825_s10] sm:$0xff]   ;;  %v309_v21 = vunpack.c.l.bf16 %v281_v18  ;;  %1722 = vset.pattern.permute.xlu2 %v1747_v13  ;;  %v329_v24 = vunpack.c.l.bf16 %v1831_v22  ;;  %v330_v25 = vunpack.c.h.bf16 %v1831_v22  ;;  %v283_v41 = vld [vmem:[%s1825_s10 + $0x10] sm:$0xff]   ;;  %v1869_v44 = vld [vmem:[%s1825_s10 + $0x68] sm:$0xff]   ;;  %v310_v47 = vunpack.c.h.bf16 %v281_v18  ;;  %s277_s8 = scalar_lea.vmem %s2245_s4, %s1474_s7 }
  0x13   : > { %v307_v19 = vunpack.c.l.bf16 %v279_v17  ;;  %v308_v20 = vunpack.c.h.bf16 %v279_v17  ;;  %v1834_v23 = vld [vmem:[%s1825_s10 + $0x60] sm:$0xff]   ;;  %1555 = vmatmul.msk.bf16.vlgmr.msra.gmra.mxu1 %vm418_vm1, %v1591_v16  ;;  %v311_v48 = vunpack.c.l.bf16 %v283_v41  ;;  %v333_v51 = vunpack.c.l.bf16 %v1869_v44  ;;  %1070 = vperm.xlu1 %1721, %v1032_v52   ;;  %v1592_v55 = vld [vmem:[%s1825_s10 + $0x8] sm:$0xff]  ;;  %v285_v5 = vld [vmem:[%s1825_s10 + $0x18] sm:$0xff]  }
  0x14   : > { %v331_v26 = vunpack.c.l.bf16 %v1834_v23  ;;  %v339_v29 = vrot.slane %v309_v21, 1  ;;  %v1845_v30 = vrot.slane %v329_v24, 1  ;;  %v360_v31 = vrot.slane %v330_v25, 1  ;;  %v1593_v12 = vld [vmem:[%s1825_s10 + $0x10] sm:$0xff] }
  0x15   : > { %1692 = vmatpush.bf16.msrb.mxu3 %v662_v9  ;;  %v1841_v27 = vrot.slane %v307_v19, 1  ;;  %v338_v28 = vrot.slane %v308_v20, 1  ;;  %v1851_v33 = vrot.slane %v307_v19, 2  ;;  %v744_v40 = vrot.slane %v308_v20, 2 }
  0x16   : > { %v361_v32 = vrot.slane %v331_v26, 1  ;;  %v372_v39 = vsel %vm367_vm2, %v1845_v30, %v360_v31  ;;  %v745_v43 = vrot.slane %v309_v21, 2  ;;  %v332_v50 = vunpack.c.h.bf16 %v1834_v23 }
  0x17   : > { %v393_v35 = vsel %vm367_vm2, %v338_v28, %v339_v29  ;;  %v394_v36 = vsel %vm367_vm2, %v1841_v27, %v338_v28  ;;  %v798_v45 = vsel %vm771_vm3, %v1851_v33, %v744_v40  ;;  %v340_v53 = vrot.slane %v310_v47, 1 }
  0x18   : > { %v396_v37 = vpack.c.bf16 %v393_v35, %v394_v36  ;;  %v371_v38 = vsel %vm367_vm2, %v360_v31, %v361_v32  ;;  %1065 = vperm.xlu0 %1720, %v1031_v34   ;;  %v797_v46 = vsel %vm771_vm3, %v744_v40, %v745_v43  ;;  %v341_v54 = vrot.slane %v311_v48, 1 }
  0x19   : > { %v407_v42 = vpack.c.bf16 %v371_v38, %v372_v39  ;;  %v800_v49 = vpack.c.bf16 %v797_v46, %v798_v45  ;;  %v362_v56 = vrot.slane %v332_v50, 1  ;;  %v363_v57 = vrot.slane %v333_v51, 1  ;;  %v1037_v38 = vld [vmem:[%s2243_s2 + $0x38] sm:$0xff] }
  0x1a   : > { %1481 = vmatmul.msk.bf16.vlgmr.msra.gmra.mxu0 %vm418_vm1, %v396_v37  ;;  %v391_v58 = vsel %vm367_vm2, %v340_v53, %v341_v54  ;;  %v392_v59 = vsel %vm367_vm2, %v339_v29, %v340_v53  ;;  %v746_v60 = vrot.slane %v310_v47, 2  ;;  %v747_v61 = vrot.slane %v311_v48, 2  ;;  %v1034_v37 = vld [vmem:[%s2243_s2 + $0x20] sm:$0xff]  ;;  %v1039_v47 = vld [vmem:[%s2243_s2 + $0x48] sm:$0xff] }
  0x1b   : > { %1492 = vmatmul.msk.bf16.vlgmr.msra.gmra.mxu3 %vm418_vm1, %v407_v42  ;;  %1575 = vmatmul.msk.bf16.vlgmr.msra.gmra.mxu2 %vm418_vm1, %v800_v49  ;;  %v369_v62 = vsel %vm367_vm2, %v362_v56, %v363_v57  ;;  %v370_v63 = vsel %vm367_vm2, %v361_v32, %v362_v56  ;;  %v397_v1 = vpack.c.bf16 %v391_v58, %v392_v59  ;;  %v312_v7 = vunpack.c.h.bf16 %v283_v41  ;;  %v287_v32 = vld [vmem:[%s1825_s10 + $0x20] sm:$0xff]   ;;  %v1594_v41 = vld [vmem:[%s1825_s10 + $0x18] sm:$0xff]  ;;  %v1035_v58 = vld [vmem:[%s2243_s2 + $0x28] sm:$0xff] }
  0x1c   : > { %1693 = vmatpush.bf16.msra.mxu3 %v865_v14  ;;  %v408_v2 = vpack.c.bf16 %v369_v62, %v370_v63  ;;  %v795_v3 = vsel %vm771_vm3, %v746_v60, %v747_v61  ;;  %v796_v4 = vsel %vm771_vm3, %v745_v43, %v746_v60  ;;  %1075 = vperm.xlu1 %1721, %v1033_v0   ;;  %v313_v8 = vunpack.c.l.bf16 %v285_v5  ;;  %v1602_v49 = vld [vmem:[%s1825_s10 + $0x58] sm:$0xff]  ;;  %v1040_v59 = vld [vmem:[%s2243_s2 + $0x50] sm:$0xff]  ;;  %v1042_v60 = vld [vmem:[%s2243_s2 + $0x60] sm:$0xff] }
  0x1d   : > { %v801_v6 = vpack.c.bf16 %v795_v3, %v796_v4  ;;  %v334_v9 = vunpack.c.h.bf16 %v1869_v44  ;;  %v342_v10 = vrot.slane %v312_v7, 1  ;;  %v748_v17 = vrot.slane %v312_v7, 2  ;;  %1080 = vperm.xlu2 %1722, %v1034_v37   ;;  %v1595_v63 = vld [vmem:[%s1825_s10 + $0x20] sm:$0xff]  ;;  %v1043_v4 = vld [vmem:[%s2243_s2 + $0x68] sm:$0xff] }
  0x1e   : > { %v343_v11 = vrot.slane %v313_v8, 1  ;;  %v749_v18 = vrot.slane %v313_v8, 2  ;;  %v314_v35 = vunpack.c.h.bf16 %v285_v5  ;;  %v315_v36 = vunpack.c.l.bf16 %v287_v32  ;;  %v1045_v5 = vld [vmem:[%s2243_s2 + $0x78] sm:$0xff] }
  0x1f   : > { %v364_v13 = vrot.slane %v334_v9, 1  ;;  %v390_v16 = vsel %vm367_vm2, %v341_v54, %v342_v10  ;;  %v794_v31 = vsel %vm771_vm3, %v747_v61, %v748_v17  ;;  %v289_v54 = vld [vmem:[%s1825_s10 + $0x28] sm:$0xff]   ;;  %v316_v56 = vunpack.c.h.bf16 %v287_v32 }
  0x20   : > { %v389_v14 = vsel %vm367_vm2, %v342_v10, %v343_v11  ;;  %v793_v29 = vsel %vm771_vm3, %v748_v17, %v749_v18  ;;  %v344_v39 = vrot.slane %v314_v35, 1  ;;  %v345_v40 = vrot.slane %v315_v36, 1 }
  0x21   : > { %v368_v19 = vsel %vm367_vm2, %v363_v57, %v364_v13  ;;  %v395_v20 = vsel %vm367_vm2, %v364_v13, %v1841_v27  ;;  %v398_v21 = vpack.c.bf16 %v389_v14, %v390_v16  ;;  %v802_v34 = vpack.c.bf16 %v793_v29, %v794_v31  ;;  %v1036_v27 = vld [vmem:[%s2243_s2 + $0x30] sm:$0xff]  ;;  %v1596_v29 = vld [vmem:[%s1825_s10 + $0x28] sm:$0xff] }
  0x22   : > { %v409_v28 = vpack.c.bf16 %v395_v20, %v368_v19  ;;  %1090 = vperm.xlu0 %1720, %v1036_v27   ;;  %v387_v42 = vsel %vm367_vm2, %v344_v39, %v345_v40  ;;  %v388_v43 = vsel %vm367_vm2, %v343_v11, %v344_v39  ;;  %v750_v45 = vrot.slane %v314_v35, 2  ;;  %v1603_v11 = vld [vmem:[%s1825_s10 + $0x60] sm:$0xff]  ;;  %v291_v14 = vld [vmem:[%s1825_s10 + $0x30] sm:$0xff]   ;;  %v1051_v27 = vld [vmem:[%s2243_s2 + $0xa8] sm:$0xff] }
  0x23   : > { %1556 = vmatmul.msk.bf16.gmra.mxu1 %vm418_vm1, %v1592_v55  ;;  %v751_v46 = vrot.slane %v315_v36, 2  ;;  %v399_v48 = vpack.c.bf16 %v387_v42, %v388_v43  ;;  %v317_v57 = vunpack.c.l.bf16 %v289_v54  ;;  %v346_v61 = vrot.slane %v316_v56, 1  ;;  %v1048_v19 = vld [vmem:[%s2243_s2 + $0x90] sm:$0xff]  ;;  %v1038_v20 = vld [vmem:[%s2243_s2 + $0x40] sm:$0xff]  ;;  %v1049_v36 = vld [vmem:[%s2243_s2 + $0x98] sm:$0xff] }
  0x24   : > { %1095 = vperm.xlu1 %1721, %v1037_v38   ;;  %v792_v53 = vsel %vm771_vm3, %v749_v18, %v750_v45  ;;  %v766_v8 = vrot.slane %v330_v25, 2  ;;  %v1987_v10 = vrot.slane %v331_v26, 2  ;;  %v318_v22 = vunpack.c.h.bf16 %v289_v54  ;;  %v1046_v18 = vld [vmem:[%s2243_s2 + $0x80] sm:$0xff]  ;;  %v1604_v38 = vld [vmem:[%s1825_s10 + $0x68] sm:$0xff] }
  0x25   : > { %v791_v52 = vsel %vm771_vm3, %v750_v45, %v751_v46  ;;  %v347_v62 = vrot.slane %v317_v57, 1  ;;  %1085 = vperm.xlu2 %1722, %v1035_v58   ;;  %v753_v3 = vrot.slane %v317_v57, 2  ;;  %v319_v25 = vunpack.c.l.bf16 %v291_v14  ;;  %v1044_v58 = vld [vmem:[%s2243_s2 + $0x70] sm:$0xff] }
  0x26   : > { %v803_v55 = vpack.c.bf16 %v791_v52, %v792_v53  ;;  %v775_v26 = vsel %vm771_vm3, %v766_v8, %v1987_v10  ;;  %v320_v43 = vunpack.c.h.bf16 %v291_v14  ;;  %v1597_v53 = vld [vmem:[%s1825_s10 + $0x30] sm:$0xff] }
  0x27   : > { %v385_v0 = vsel %vm367_vm2, %v346_v61, %v347_v62  ;;  %v755_v35 = vrot.slane %v319_v25, 2 }
  0x2a   : > { %1482 = vmatmul.msk.bf16.gmra.mxu0 %vm418_vm1, %v397_v1  ;;  %1105 = vperm.xlu0 %1720, %v1039_v47   ;;  %v386_v1 = vsel %vm367_vm2, %v345_v40, %v346_v61  ;;  %v1052_v47 = vld [vmem:[%s2243_s2 + $0xb0] sm:$0xff] }
  0x2b   : > { %1493 = vmatmul.msk.bf16.gmra.mxu3 %vm418_vm1, %v408_v2  ;;  %1576 = vmatmul.msk.bf16.gmra.mxu2 %vm418_vm1, %v801_v6  ;;  %v752_v2 = vrot.slane %v316_v56, 2  ;;  %v1981_v6 = vrot.slane %v329_v24, 2  ;;  %v400_v7 = vpack.c.bf16 %v385_v0, %v386_v1  ;;  %v756_v56 = vrot.slane %v320_v43, 2 }
  0x2c   : > { %1110 = vperm.xlu1 %1721, %v1040_v59  }
  0x2d   : > { %v790_v13 = vsel %vm771_vm3, %v751_v46, %v752_v2  ;;  %v776_v16 = vsel %vm771_vm3, %v1981_v6, %v766_v8  ;;  %1100 = vperm.xlu2 %1722, %v1038_v20   ;;  %v1041_v46 = vld [vmem:[%s2243_s2 + $0x58] sm:$0xff]  ;;  %v786_v61 = vsel %vm771_vm3, %v755_v35, %v756_v56 }
  0x2e   : > { %v811_v17 = vpack.c.bf16 %v775_v26, %v776_v16  ;;  %v1598_v8 = vld [vmem:[%s1825_s10 + $0x38] sm:$0xff] }
  0x32   : > { %1120 = vperm.xlu0 %1720, %v1042_v60  }
  0x33   : > { %1557 = vmatmul.msk.bf16.gmra.mxu1 %vm418_vm1, %v1593_v12  ;;  %v789_v12 = vsel %vm771_vm3, %v752_v2, %v753_v3 }
  0x34   : > { %1125 = vperm.xlu1 %1721, %v1043_v4   ;;  %v804_v24 = vpack.c.bf16 %v789_v12, %v790_v13  ;;  %v1055_v4 = vld [vmem:[%s2243_s2 + $0xc8] sm:$0xff]  ;;  %v769_v12 = vrot.slane %v333_v51, 2  ;;  %v1050_v51 = vld [vmem:[%s2243_s2 + $0xa0] sm:$0xff] }
  0x35   : > { %1115 = vperm.xlu2 %1722, %v1041_v46  }
  0x3a   : > { %1483 = vmatmul.msk.bf16.gmra.mxu0 %vm418_vm1, %v398_v21  ;;  %1135 = vperm.xlu0 %1720, %v1045_v5   ;;  %v348_v21 = vrot.slane %v318_v22, 1 }
  0x3b   : > { %1494 = vmatmul.msk.bf16.gmra.mxu3 %vm418_vm1, %v409_v28  ;;  %1577 = vmatmul.msk.bf16.gmra.mxu2 %vm418_vm1, %v802_v34  ;;  %v349_v28 = vrot.slane %v319_v25, 1  ;;  %v754_v34 = vrot.slane %v318_v22, 2 }
  0x3c   : > { %1140 = vperm.xlu1 %1721, %v1046_v18   ;;  %v384_v32 = vsel %vm367_vm2, %v347_v62, %v348_v21  ;;  %v295_v62 = vld [vmem:[%s1825_s10 + $0x40] sm:$0xff]   ;;  %v297_v18 = vld [vmem:[%s1825_s10 + $0x48] sm:$0xff]  }
  0x3d   : > { %v383_v31 = vsel %vm367_vm2, %v348_v21, %v349_v28  ;;  %v787_v39 = vsel %vm771_vm3, %v754_v34, %v755_v35  ;;  %v788_v40 = vsel %vm771_vm3, %v753_v3, %v754_v34  ;;  %1130 = vperm.xlu2 %1722, %v1044_v58   ;;  %v323_v2 = vunpack.c.l.bf16 %v295_v62  ;;  %v1047_v3 = vld [vmem:[%s2243_s2 + $0x88] sm:$0xff] }
  0x3e   : > { %v401_v37 = vpack.c.bf16 %v383_v31, %v384_v32  ;;  %v805_v42 = vpack.c.bf16 %v787_v39, %v788_v40  ;;  %v325_v20 = vunpack.c.l.bf16 %v297_v18  ;;  %v770_v31 = vrot.slane %v334_v9, 2  ;;  %v1053_v32 = vld [vmem:[%s2243_s2 + $0xb8] sm:$0xff] }
  0x3f   : > { %v759_v22 = vrot.slane %v323_v2, 2 }
  0x40   : > { %v772_v44 = vsel %vm771_vm3, %v769_v12, %v770_v31  ;;  %v799_v9 = vsel %vm771_vm3, %v770_v31, %v1851_v33  ;;  %v326_v33 = vunpack.c.h.bf16 %v297_v18 }
  0x42   : > { %1150 = vperm.xlu0 %1720, %v1048_v19  }
  0x43   : > { %1558 = vmatmul.msk.bf16.gmra.mxu1 %vm418_vm1, %v1594_v41  ;;  %v293_v41 = vld [vmem:[%s1825_s10 + $0x38] sm:$0xff]  }
  0x44   : > { %1155 = vperm.xlu1 %1721, %v1049_v36   ;;  %v321_v45 = vunpack.c.l.bf16 %v293_v41  ;;  %v322_v1 = vunpack.c.h.bf16 %v293_v41 }
  0x45   : > { %1145 = vperm.xlu2 %1722, %v1047_v3  }
  0x46   : > { %v351_v52 = vrot.slane %v321_v45, 1  ;;  %v757_v57 = vrot.slane %v321_v45, 2  ;;  %v352_v5 = vrot.slane %v322_v1, 1 }
  0x48   : > { %v785_v60 = vsel %vm771_vm3, %v756_v56, %v757_v57  ;;  %v380_v14 = vsel %vm367_vm2, %v351_v52, %v352_v5  ;;  %v1600_v56 = vld [vmem:[%s1825_s10 + $0x48] sm:$0xff] }
  0x49   : > { %v806_v0 = vpack.c.bf16 %v785_v60, %v786_v61 }
  0x4a   : > { %1484 = vmatmul.msk.bf16.gmra.mxu0 %vm418_vm1, %v399_v48  ;;  %1165 = vperm.xlu0 %1720, %v1051_v27   ;;  %v1054_v48 = vld [vmem:[%s2243_s2 + $0xc0] sm:$0xff] }
  0x4b   : > { %1566 = vmatmul.msk.bf16.vlgmr.msrb.gmra.mxu3 %vm418_vm1, %v1602_v49  ;;  %1578 = vmatmul.msk.bf16.gmra.mxu2 %vm418_vm1, %v803_v55  ;;  %v350_v49 = vrot.slane %v320_v43, 1  ;;  %v299_v43 = vld [vmem:[%s1825_s10 + $0x50] sm:$0xff]  }
  0x4c   : > { %1170 = vperm.xlu1 %1721, %v1052_v47   ;;  %v1056_v47 = vld [vmem:[%s2243_s2 + $0xd0] sm:$0xff] }
  0x4d   : > { %v381_v54 = vsel %vm367_vm2, %v350_v49, %v351_v52  ;;  %v382_v55 = vsel %vm367_vm2, %v349_v28, %v350_v49  ;;  %1160 = vperm.xlu2 %1722, %v1050_v51   ;;  %v355_v28 = vrot.slane %v325_v20, 1 }
  0x4e   : > { %v402_v59 = vpack.c.bf16 %v381_v54, %v382_v55  ;;  %v356_v54 = vrot.slane %v326_v33, 1 }
  0x50   : > { %v376_v61 = vsel %vm367_vm2, %v355_v28, %v356_v54 }
  0x52   : > { %1180 = vperm.xlu0 %1720, %v1054_v48   ;;  %v327_v48 = vunpack.c.l.bf16 %v299_v43 }
  0x53   : > { %1559 = vmatmul.msk.bf16.gmra.mxu1 %vm418_vm1, %v1595_v63  ;;  %v1057_v63 = vld [vmem:[%s2243_s2 + $0xd8] sm:$0xff] }
  0x54   : > { %1185 = vperm.xlu1 %1721, %v1055_v4   ;;  %v357_v55 = vrot.slane %v327_v48, 1 }
  0x55   : > { %1175 = vperm.xlu2 %1722, %v1053_v32  }
  0x56   : > { %v375_v60 = vsel %vm367_vm2, %v356_v54, %v357_v55 }
  0x5a   : > { %1485 = vmatmul.msk.bf16.gmra.mxu0 %vm418_vm1, %v400_v7  ;;  %1195 = vperm.xlu0 %1720, %v1057_v63   ;;  %v353_v7 = vrot.slane %v323_v2, 1  ;;  %v763_v63 = vrot.slane %v327_v48, 2  ;;  %v405_v2 = vpack.c.bf16 %v375_v60, %v376_v61 }
  0x5b   : > { %1567 = vmatmul.msk.bf16.gmra.mxu3 %vm418_vm1, %v1603_v11  ;;  %1579 = vmatmul.msk.bf16.gmra.mxu2 %vm418_vm1, %v804_v24  ;;  %v768_v11 = vrot.slane %v332_v50, 2  ;;  %v758_v24 = vrot.slane %v322_v1, 2 }
  0x5c   : > { %v379_v13 = vsel %vm367_vm2, %v352_v5, %v353_v7 }
  0x5d   : > { %v773_v25 = vsel %vm771_vm3, %v768_v11, %v769_v12  ;;  %v774_v23 = vsel %vm771_vm3, %v1987_v10, %v768_v11  ;;  %v403_v50 = vpack.c.bf16 %v379_v13, %v380_v14  ;;  %v783_v26 = vsel %vm771_vm3, %v758_v24, %v759_v22  ;;  %1190 = vperm.xlu2 %1722, %v1056_v47  }
  0x5e   : > { %v784_v16 = vsel %vm771_vm3, %v757_v57, %v758_v24  ;;  %v324_v10 = vunpack.c.h.bf16 %v295_v62  ;;  %v762_v62 = vrot.slane %v326_v33, 2 }
  0x5f   : > { %v807_v19 = vpack.c.bf16 %v783_v26, %v784_v16 }
  0x60   : > { %v354_v21 = vrot.slane %v324_v10, 1  ;;  %v760_v27 = vrot.slane %v324_v10, 2  ;;  %v779_v4 = vsel %vm771_vm3, %v762_v62, %v763_v63 }
  0x62   : > { %v377_v35 = vsel %vm367_vm2, %v354_v21, %v355_v28  ;;  %v378_v36 = vsel %vm367_vm2, %v353_v7, %v354_v21  ;;  %v782_v41 = vsel %vm771_vm3, %v759_v22, %v760_v27  ;;  %v328_v22 = vunpack.c.h.bf16 %v299_v43  ;;  %v1601_v21 = vld [vmem:[%s1825_s10 + $0x50] sm:$0xff] }
  0x63   : > { %1560 = vmatmul.msk.bf16.gmra.mxu1 %vm418_vm1, %v1596_v29  ;;  %v1599_v29 = vld [vmem:[%s1825_s10 + $0x40] sm:$0xff] }
  0x64   : > { %v358_v10 = vrot.slane %v328_v22, 1 }
  0x66   : > { %v373_v32 = vsel %vm367_vm2, %v358_v10, %v1845_v30 }
  0x6a   : > { %1486 = vmatmul.msk.bf16.gmra.mxu0 %vm418_vm1, %v401_v37  ;;  %v761_v37 = vrot.slane %v325_v20, 2 }
  0x6b   : > { %1568 = vmatmul.msk.bf16.gmra.mxu3 %vm418_vm1, %v1604_v38  ;;  %1580 = vmatmul.msk.bf16.gmra.mxu2 %vm418_vm1, %v805_v42  ;;  %v404_v38 = vpack.c.bf16 %v377_v35, %v378_v36  ;;  %v813_v42 = vpack.c.bf16 %v799_v9, %v772_v44  ;;  %v764_v35 = vrot.slane %v328_v22, 2 }
  0x6c   : > { %v781_v40 = vsel %vm771_vm3, %v760_v27, %v761_v37  ;;  %v780_v5 = vsel %vm771_vm3, %v761_v37, %v762_v62 }
  0x6d   : > { %v808_v46 = vpack.c.bf16 %v781_v40, %v782_v41  ;;  %v809_v24 = vpack.c.bf16 %v779_v4, %v780_v5  ;;  %v778_v30 = vsel %vm771_vm3, %v763_v63, %v764_v35 }
  0x73   : > { %1561 = vmatmul.msk.bf16.gmra.mxu1 %vm418_vm1, %v1597_v53 }
  0x77   : > { %v1081_v15 = vpop.permute.xlu2 %1080 }
  0x7a   : > { %1487 = vmatmul.msk.bf16.gmra.mxu0 %vm418_vm1, %v402_v59 }
  0x7b   : > { %1586 = vmatmul.msk.bf16.vlgmr.msra.gmra.mxu3 %vm418_vm1, %v811_v17  ;;  %1581 = vmatmul.msk.bf16.gmra.mxu2 %vm418_vm1, %v806_v0  ;;  %v812_v17 = vpack.c.bf16 %v773_v25, %v774_v23 }
  0x7f   : > { %v1086_v4 = vpop.permute.xlu2 %1085 }
  0x82   : > { %v1061_v52 = vpop.permute.xlu0 %1060 }
  0x83   : > { %1562 = vmatmul.msk.bf16.gmra.mxu1 %vm418_vm1, %v1598_v8 }
  0x85   : > { %v1071_v18 = vpop.permute.xlu1 %1070 }
  0x8a   : > { %1488 = vmatmul.msk.bf16.gmra.mxu0 %vm418_vm1, %v403_v50  ;;  %v1066_v8 = vpop.permute.xlu0 %1065 }
  0x8b   : > { %1587 = vmatmul.msk.bf16.gmra.mxu3 %vm418_vm1, %v812_v17  ;;  %1582 = vmatmul.msk.bf16.gmra.mxu2 %vm418_vm1, %v807_v19 }
  0x90   : > { %v673_v34 = vpop.f32.mrf.mxu1 }
  0x93   : > { %1563 = vmatmul.msk.bf16.gmra.mxu1 %vm418_vm1, %v1599_v29 }
  0x97   : > { %v474_v39 = vpop.f32.mrf.mxu0 }
  0x98   : > { %v675_v45 = vpop.f32.mrf.mxu1  ;;  %v674_v57 = vadd.f32 %v673_v34, %v474_v39  ;;  %v374_v34 = vsel %vm367_vm2, %v357_v55, %v358_v10  ;;  %v777_v39 = vsel %vm771_vm3, %v764_v35, %v1981_v6 }
  0x99   : > { %v406_v9 = vpack.c.bf16 %v373_v32, %v374_v34  ;;  %v810_v47 = vpack.c.bf16 %v777_v39, %v778_v30 }
  0x9a   : > { %1489 = vmatmul.msk.bf16.gmra.mxu0 %vm418_vm1, %v404_v38 }
  0x9b   : > { %1588 = vmatmul.msk.bf16.gmra.mxu3 %vm418_vm1, %v813_v42  ;;  %1583 = vmatmul.msk.bf16.gmra.mxu2 %vm418_vm1, %v808_v46  ;;  %v1076_v42 = vpop.permute.xlu1 %1075 }
  0x9e   : > { %v2122_v49 = vpop.f32.mrf.mxu3  ;;  %v876_v58 = vpop.f32.mrf.mxu2 }
  0x9f   : > { %v476_v53 = vpop.f32.mrf.mxu0  ;;  %v946_v0 = vadd.f32 %v876_v58, %v674_v57 }
  0xa0   : > { %v678_v59 = vpop.f32.mrf.mxu1  ;;  %v676_v7 = vadd.f32 %v675_v45, %v476_v53 }
  0xa1   : > { %v1198_v11 = vmul.f32 %v1061_v52, %v946_v0 }
  0xa3   : > { %1564 = vmatmul.msk.bf16.gmra.mxu1 %vm418_vm1, %v1600_v56  ;;  %v1259_v50 = vmul.f32 %v1198_v11, %v1198_v11 }
  0xa6   : > { %v2130_v1 = vpop.f32.mrf.mxu3  ;;  %v878_v12 = vpop.f32.mrf.mxu2 }
  0xa7   : > { %v479_v3 = vpop.f32.mrf.mxu0  ;;  %v947_v14 = vadd.f32 %v878_v12, %v676_v7 }
  0xa8   : > { %v680_v13 = vpop.f32.mrf.mxu1  ;;  %v679_v16 = vadd.f32 %v678_v59, %v479_v3 }
  0xa9   : > { %v1611_v25 = vpack.c.bf16 %v947_v14, %v946_v0  ;;  %v1199_v23 = vmul.f32 %v1066_v8, %v947_v14 }
  0xaa   : > { %1490 = vmatmul.msk.bf16.gmra.mxu0 %vm418_vm1, %v405_v2 }
  0xab   : > { %1612 = vst [vmem:[%s2142_s5] sm:$0xff] %v1611_v25   ;;  %v1226_v51 = vadd.f32 %v1199_v23, %v1198_v11  ;;  %v1260_v26 = vmul.f32 %v1199_v23, %v1199_v23  ;;  %1584 = vmatmul.msk.bf16.gmra.mxu2 %vm418_vm1, %v809_v24 }
  0xad   : > { %v1287_v20 = vadd.f32 %v1260_v26, %v1259_v50  ;;  %v1091_v50 = vpop.permute.xlu0 %1090 }
  0xae   : > { %v2146_v17 = vpop.f32.mrf.mxu3  ;;  %v881_v28 = vpop.f32.mrf.mxu2 }
  0xaf   : > { %v481_v19 = vpop.f32.mrf.mxu0  ;;  %v948_v31 = vadd.f32 %v881_v28, %v679_v16 }
  0xb0   : > { %v683_v29 = vpop.f32.mrf.mxu1  ;;  %v681_v41 = vadd.f32 %v680_v13, %v481_v19 }
  0xb1   : > { %v1200_v36 = vmul.f32 %v1071_v18, %v948_v31 }
  0xb3   : > { %1565 = vmatmul.msk.bf16.gmra.mxu1 %vm418_vm1, %v1601_v21  ;;  %v1227_v27 = vadd.f32 %v1226_v51, %v1200_v36  ;;  %v1261_v37 = vmul.f32 %v1200_v36, %v1200_v36 }
  0xb5   : > { %v1288_v40 = vadd.f32 %v1287_v20, %v1261_v37 }
  0xb6   : > { %v2155_v44 = vpop.f32.mrf.mxu3  ;;  %v883_v43 = vpop.f32.mrf.mxu2 }
  0xb7   : > { %v484_v38 = vpop.f32.mrf.mxu0  ;;  %v949_v46 = vadd.f32 %v883_v43, %v681_v41  ;;  %v1101_v41 = vpop.permute.xlu2 %1100 }
  0xb8   : > { %v685_v45 = vpop.f32.mrf.mxu1  ;;  %v684_v54 = vadd.f32 %v683_v29, %v484_v38 }
  0xb9   : > { %v1616_v33 = vpack.c.bf16 %v949_v46, %v948_v31  ;;  %v1201_v48 = vmul.f32 %v1076_v42, %v949_v46  ;;  %v1096_v31 = vpop.permute.xlu1 %1095 }
  0xba   : > { %1491 = vmatmul.msk.bf16.gmra.mxu0 %vm418_vm1, %v406_v9 }
  0xbb   : > { %1678 = vst [vmem:[%s2142_s5 + $0x8] sm:$0xff] %v1616_v33   ;;  %v1228_v52 = vadd.f32 %v1227_v27, %v1201_v48  ;;  %v1262_v53 = vmul.f32 %v1201_v48, %v1201_v48  ;;  %1585 = vmatmul.msk.bf16.gmra.mxu2 %vm418_vm1, %v810_v47 }
  0xbd   : > { %v1289_v56 = vadd.f32 %v1288_v40, %v1262_v53 }
  0xbe   : > { %v2165_v6 = vpop.f32.mrf.mxu3  ;;  %v886_v57 = vpop.f32.mrf.mxu2 }
  0xbf   : > { %v486_v55 = vpop.f32.mrf.mxu0  ;;  %v950_v59 = vadd.f32 %v886_v57, %v684_v54  ;;  %v1106_v57 = vpop.permute.xlu0 %1105 }
  0xc0   : > { %v688_v58 = vpop.f32.mrf.mxu1  ;;  %v686_v3 = vadd.f32 %v685_v45, %v486_v55 }
  0xc1   : > { %v1202_v60 = vmul.f32 %v1081_v15, %v950_v59 }
  0xc3   : > { %v1229_v61 = vadd.f32 %v1228_v52, %v1202_v60  ;;  %v1263_v62 = vmul.f32 %v1202_v60, %v1202_v60 }
  0xc5   : > { %v1290_v2 = vadd.f32 %v1289_v56, %v1263_v62 }
  0xc6   : > { %v2167_v63 = vpop.f32.mrf.mxu3  ;;  %v888_v5 = vpop.f32.mrf.mxu2 }
  0xc7   : > { %v489_v0 = vpop.f32.mrf.mxu0  ;;  %v951_v8 = vadd.f32 %v888_v5, %v686_v3 }
  0xc8   : > { %v690_v7 = vpop.f32.mrf.mxu1  ;;  %v689_v24 = vadd.f32 %v688_v58, %v489_v0 }
  0xc9   : > { %v1621_v11 = vpack.c.bf16 %v951_v8, %v950_v59  ;;  %v1203_v12 = vmul.f32 %v1086_v4, %v951_v8 }
  0xcb   : > { %1679 = vst [vmem:[%s2142_s5 + $0x10] sm:$0xff] %v1621_v11   ;;  %v1230_v13 = vadd.f32 %v1229_v61, %v1203_v12  ;;  %v1264_v14 = vmul.f32 %v1203_v12, %v1203_v12 }
  0xcd   : > { %v1291_v23 = vadd.f32 %v1290_v2, %v1264_v14 }
  0xce   : > { %v2170_v22 = vpop.f32.mrf.mxu3  ;;  %v891_v51 = vpop.f32.mrf.mxu2 }
  0xcf   : > { %v491_v25 = vpop.f32.mrf.mxu0  ;;  %v952_v16 = vadd.f32 %v891_v51, %v689_v24 }
  0xd0   : > { %v693_v26 = vpop.f32.mrf.mxu1  ;;  %v691_v29 = vadd.f32 %v690_v7, %v491_v25 }
  0xd1   : > { %v1204_v18 = vmul.f32 %v1091_v50, %v952_v16 }
  0xd3   : > { %v1231_v19 = vadd.f32 %v1230_v13, %v1204_v18  ;;  %v1265_v10 = vmul.f32 %v1204_v18, %v1204_v18 }
  0xd5   : > { %v1292_v28 = vadd.f32 %v1291_v23, %v1265_v10 }
  0xd6   : > { %v730_v20 = vpop.f32.mrf.mxu3  ;;  %v893_v32 = vpop.f32.mrf.mxu2 }
  0xd7   : > { %v494_v21 = vpop.f32.mrf.mxu0  ;;  %v953_v35 = vadd.f32 %v893_v32, %v691_v29  ;;  %v731_v18 = vadd.f32 %v730_v20, %v2130_v1 }
  0xd8   : > { %v695_v34 = vpop.f32.mrf.mxu1  ;;  %v694_v38 = vadd.f32 %v693_v26, %v494_v21 }
  0xd9   : > { %v1626_v36 = vpack.c.bf16 %v953_v35, %v952_v16  ;;  %v1205_v27 = vmul.f32 %v1096_v31, %v953_v35  ;;  %v729_v16 = vadd.f32 %v2170_v22, %v2122_v49 }
  0xdb   : > { %1680 = vst [vmem:[%s2142_s5 + $0x18] sm:$0xff] %v1626_v36   ;;  %v1232_v37 = vadd.f32 %v1231_v19, %v1205_v27  ;;  %v1266_v9 = vmul.f32 %v1205_v27, %v1205_v27 }
  0xdd   : > { %v1293_v40 = vadd.f32 %v1292_v28, %v1266_v9 }
  0xde   : > { %v733_v39 = vpop.f32.mrf.mxu3  ;;  %v896_v42 = vpop.f32.mrf.mxu2 }
  0xdf   : > { %v496_v30 = vpop.f32.mrf.mxu0  ;;  %v954_v45 = vadd.f32 %v896_v42, %v694_v38  ;;  %v734_v20 = vadd.f32 %v733_v39, %v2146_v17 }
  0xe0   : > { %v698_v43 = vpop.f32.mrf.mxu1  ;;  %v696_v54 = vadd.f32 %v695_v34, %v496_v30 }
  0xe1   : > { %v1206_v46 = vmul.f32 %v1101_v41, %v954_v45 }
  0xe3   : > { %v1233_v47 = vadd.f32 %v1232_v37, %v1206_v46  ;;  %v1267_v33 = vmul.f32 %v1206_v46, %v1206_v46 }
  0xe5   : > { %v1294_v53 = vadd.f32 %v1293_v40, %v1267_v33 }
  0xe6   : > { %v735_v48 = vpop.f32.mrf.mxu3  ;;  %v898_v15 = vpop.f32.mrf.mxu2 }
  0xe7   : > { %v499_v52 = vpop.f32.mrf.mxu0  ;;  %v955_v56 = vadd.f32 %v898_v15, %v696_v54  ;;  %v736_v9 = vadd.f32 %v735_v48, %v2155_v44  ;;  %v1111_v48 = vpop.permute.xlu1 %1110 }
  0xe8   : > { %v700_v55 = vpop.f32.mrf.mxu1  ;;  %v699_v5 = vadd.f32 %v698_v43, %v499_v52  ;;  %v1121_v15 = vpop.permute.xlu0 %1120 }
  0xe9   : > { %v1631_v58 = vpack.c.bf16 %v955_v56, %v954_v45  ;;  %v1207_v59 = vmul.f32 %v1106_v57, %v955_v56 }
  0xeb   : > { %1681 = vst [vmem:[%s2142_s5 + $0x20] sm:$0xff] %v1631_v58   ;;  %v2174_v60 = vadd.f32 %v1233_v47, %v1207_v59  ;;  %v1268_v61 = vmul.f32 %v1207_v59, %v1207_v59 }
  0xed   : > { %v2176_v2 = vadd.f32 %v1294_v53, %v1268_v61 }
  0xee   : > { %v738_v62 = vpop.f32.mrf.mxu3  ;;  %v901_v3 = vpop.f32.mrf.mxu2 }
  0xef   : > { %v501_v0 = vpop.f32.mrf.mxu0  ;;  %v2178_v14 = vadd.f32 %v901_v3, %v699_v5  ;;  %v739_v56 = vadd.f32 %v738_v62, %v2165_v6 }
  0xf0   : > { %v703_v4 = vpop.f32.mrf.mxu1  ;;  %v701_v11 = vadd.f32 %v700_v55, %v501_v0  ;;  %v1116_v55 = vpop.permute.xlu2 %1115 }
  0xf1   : > { %v1136_v6 = vpop.permute.xlu0 %1135 }
  0xf6   : > { %v740_v7 = vpop.f32.mrf.mxu3  ;;  %v903_v12 = vpop.f32.mrf.mxu2 }
  0xf7   : > { %v504_v8 = vpop.f32.mrf.mxu0  ;;  %v2180_v24 = vadd.f32 %v903_v12, %v701_v11  ;;  %v741_v57 = vadd.f32 %v740_v7, %v2167_v63  ;;  %v1126_v12 = vpop.permute.xlu1 %1125  ;;  %v1208_v7 = vmul.f32 %v1111_v48, %v2178_v14 }
  0xf8   : > { %v705_v13 = vpop.f32.mrf.mxu1  ;;  %v704_v19 = vadd.f32 %v703_v4, %v504_v8  ;;  %v1131_v62 = vpop.permute.xlu2 %1130 }
  0xf9   : > { %v1636_v25 = vpack.c.bf16 %v2180_v24, %v2178_v14 }
  0xfb   : > { %1682 = vst [vmem:[%s2142_s5 + $0x28] sm:$0xff] %v1636_v25  }
  0xfe   : > { %v931_v23 = vpop.f32.mrf.mxu3  ;;  %v906_v51 = vpop.f32.mrf.mxu2 }
  0xff   : > { %v506_v50 = vpop.f32.mrf.mxu0  ;;  %v2188_v21 = vadd.f32 %v931_v23, %v729_v16  ;;  %v958_v35 = vadd.f32 %v906_v51, %v704_v19  ;;  %v1209_v51 = vmul.f32 %v1116_v55, %v2180_v24  ;;  %v1141_v16 = vpop.permute.xlu1 %1140 }
 0x100   : > { %v708_v26 = vpop.f32.mrf.mxu1  ;;  %v706_v31 = vadd.f32 %v705_v13, %v506_v50 }
 0x101   : > { %v1210_v19 = vmul.f32 %v1121_v15, %v958_v35 }
 0x106   : > { %v933_v10 = vpop.f32.mrf.mxu3  ;;  %v908_v32 = vpop.f32.mrf.mxu2 }
 0x107   : > { %v2190_v28 = vadd.f32 %v933_v10, %v731_v18  ;;  %v509_v29 = vpop.f32.mrf.mxu0  ;;  %v959_v36 = vadd.f32 %v908_v32, %v706_v31  ;;  %v1269_v18 = vmul.f32 %v1208_v7, %v1208_v7  ;;  %v1151_v10 = vpop.permute.xlu0 %1150  ;;  %v1270_v31 = vmul.f32 %v1209_v51, %v1209_v51 }
 0x108   : > { %v710_v27 = vpop.f32.mrf.mxu1  ;;  %v709_v30 = vadd.f32 %v708_v26, %v509_v29  ;;  %v1146_v32 = vpop.permute.xlu2 %1145 }
 0x109   : > { %v1666_v34 = vpack.c.bf16 %v2190_v28, %v2188_v21  ;;  %v1641_v37 = vpack.c.bf16 %v959_v36, %v958_v35 }
 0x10b   : > { %1688 = vst [vmem:[%s2142_s5 + $0x58] sm:$0xff] %v1666_v34   ;;  %v1211_v34 = vmul.f32 %v1126_v12, %v959_v36 }
 0x10c   : > { %1683 = vst [vmem:[%s2142_s5 + $0x30] sm:$0xff] %v1641_v37  }
 0x10e   : > { %v936_v49 = vpop.f32.mrf.mxu3  ;;  %v911_v22 = vpop.f32.mrf.mxu2 }
 0x10f   : > { %v511_v1 = vpop.f32.mrf.mxu0  ;;  %v2198_v41 = vadd.f32 %v936_v49, %v734_v20  ;;  %v960_v33 = vadd.f32 %v911_v22, %v709_v30  ;;  %v1296_v49 = vadd.f32 %v2176_v2, %v1269_v18  ;;  %v1272_v30 = vmul.f32 %v1211_v34, %v1211_v34 }
 0x110   : > { %v713_v38 = vpop.f32.mrf.mxu1  ;;  %v711_v45 = vadd.f32 %v710_v27, %v511_v1  ;;  %v1235_v27 = vadd.f32 %v2174_v60, %v1208_v7  ;;  %v1271_v1 = vmul.f32 %v1210_v19, %v1210_v19  ;;  %v1156_v60 = vpop.permute.xlu1 %1155 }
 0x111   : > { %v1212_v14 = vmul.f32 %v1131_v62, %v960_v33  ;;  %v1161_v15 = vpop.permute.xlu2 %1160 }
 0x112   : > { %v1236_v20 = vadd.f32 %v1235_v27, %v1209_v51 }
 0x113   : > { %v1273_v36 = vmul.f32 %v1212_v14, %v1212_v14 }
 0x116   : > { %v938_v40 = vpop.f32.mrf.mxu3  ;;  %v913_v46 = vpop.f32.mrf.mxu2 }
 0x117   : > { %v2200_v42 = vadd.f32 %v938_v40, %v736_v9  ;;  %v514_v43 = vpop.f32.mrf.mxu0  ;;  %v961_v52 = vadd.f32 %v913_v46, %v711_v45  ;;  %v1237_v40 = vadd.f32 %v1236_v20, %v1210_v19 }
 0x118   : > { %v715_v44 = vpop.f32.mrf.mxu1  ;;  %v714_v58 = vadd.f32 %v713_v38, %v514_v43  ;;  %v1297_v38 = vadd.f32 %v1296_v49, %v1270_v31  ;;  %v1171_v7 = vpop.permute.xlu1 %1170 }
 0x119   : > { %v1671_v47 = vpack.c.bf16 %v2200_v42, %v2198_v41  ;;  %v1646_v53 = vpack.c.bf16 %v961_v52, %v960_v33  ;;  %v1213_v43 = vmul.f32 %v1136_v6, %v961_v52 }
 0x11a   : > { %v1298_v46 = vadd.f32 %v1297_v38, %v1271_v1 }
 0x11b   : > { %1689 = vst [vmem:[%s2142_s5 + $0x60] sm:$0xff] %v1671_v47   ;;  %v1274_v48 = vmul.f32 %v1213_v43, %v1213_v43 }
 0x11c   : > { %1684 = vst [vmem:[%s2142_s5 + $0x38] sm:$0xff] %v1646_v53   ;;  %v1238_v53 = vadd.f32 %v1237_v40, %v1211_v34  ;;  %v1299_v33 = vadd.f32 %v1298_v46, %v1272_v30 }
 0x11e   : > { %v941_v17 = vpop.f32.mrf.mxu3  ;;  %v916_v54 = vpop.f32.mrf.mxu2  ;;  %v1300_v55 = vadd.f32 %v1299_v33, %v1273_v36 }
 0x11f   : > { %v516_v39 = vpop.f32.mrf.mxu0  ;;  %v2208_v61 = vadd.f32 %v941_v17, %v739_v56  ;;  %v962_v13 = vadd.f32 %v916_v54, %v714_v58 }
 0x120   : > { %v716_v4 = vadd.f32 %v715_v44, %v516_v39  ;;  %v718_v5 = vpop.f32.mrf.mxu1  ;;  %v1166_v44 = vpop.permute.xlu0 %1165  ;;  %v1239_v39 = vadd.f32 %v1238_v53, %v1212_v14 }
 0x121   : > { %v1214_v17 = vmul.f32 %v1141_v16, %v962_v13 }
 0x123   : > { %v1275_v58 = vmul.f32 %v1214_v17, %v1214_v17 }
 0x126   : > { %v943_v59 = vpop.f32.mrf.mxu3  ;;  %v918_v8 = vpop.f32.mrf.mxu2 }
 0x127   : > { %v2210_v0 = vadd.f32 %v943_v59, %v741_v57  ;;  %v519_v3 = vpop.f32.mrf.mxu0  ;;  %v963_v25 = vadd.f32 %v918_v8, %v716_v4  ;;  %v1240_v57 = vadd.f32 %v1239_v39, %v1213_v43 }
 0x128   : > { %v720_v26 = vpop.f32.mrf.mxu1  ;;  %v719_v29 = vadd.f32 %v718_v5, %v519_v3  ;;  %v1301_v3 = vadd.f32 %v1300_v55, %v1274_v48  ;;  %v1181_v31 = vpop.permute.xlu0 %1180 }
 0x129   : > { %v1676_v11 = vpack.c.bf16 %v2210_v0, %v2208_v61  ;;  %v1651_v63 = vpack.c.bf16 %v963_v25, %v962_v13  ;;  %v1215_v54 = vmul.f32 %v1146_v32, %v963_v25  ;;  %v1241_v4 = vadd.f32 %v1240_v57, %v1214_v17  ;;  %v1176_v32 = vpop.permute.xlu2 %1175 }
 0x12a   : > { %v1302_v12 = vadd.f32 %v1301_v3, %v1275_v58  ;;  %v1221_v1 = vmul.f32 %v1176_v32, %v2190_v28 }
 0x12b   : > { %1690 = vst [vmem:[%s2142_s5 + $0x68] sm:$0xff] %v1676_v11   ;;  %v1276_v5 = vmul.f32 %v1215_v54, %v1215_v54  ;;  %v1242_v13 = vadd.f32 %v1241_v4, %v1215_v54 }
 0x12c   : > { %1685 = vst [vmem:[%s2142_s5 + $0x40] sm:$0xff] %v1651_v63   ;;  %v1282_v40 = vmul.f32 %v1221_v1, %v1221_v1 }
 0x12e   : > { %v921_v23 = vpop.f32.mrf.mxu2 }
 0x12f   : > { %v521_v50 = vpop.f32.mrf.mxu0  ;;  %v964_v24 = vadd.f32 %v921_v23, %v719_v29  ;;  %v1303_v23 = vadd.f32 %v1302_v12, %v1276_v5  ;;  %v1220_v29 = vmul.f32 %v1171_v7, %v2188_v21 }
 0x130   : > { %v721_v37 = vadd.f32 %v720_v26, %v521_v50  ;;  %v723_v47 = vpop.f32.mrf.mxu1  ;;  %v1196_v53 = vpop.permute.xlu0 %1195 }
 0x131   : > { %v1216_v52 = vmul.f32 %v1151_v10, %v964_v24  ;;  %v1191_v46 = vpop.permute.xlu2 %1190 }
 0x133   : > { %v1277_v6 = vmul.f32 %v1216_v52, %v1216_v52  ;;  %v1243_v25 = vadd.f32 %v1242_v13, %v1216_v52 }
 0x135   : > { %v1304_v16 = vadd.f32 %v1303_v23, %v1277_v6 }
 0x136   : > { %v923_v22 = vpop.f32.mrf.mxu2 }
 0x137   : > { %v965_v9 = vadd.f32 %v923_v22, %v721_v37  ;;  %v524_v35 = vpop.f32.mrf.mxu0 }
 0x138   : > { %v724_v2 = vadd.f32 %v723_v47, %v524_v35  ;;  %v725_v62 = vpop.f32.mrf.mxu1  ;;  %v1186_v35 = vpop.permute.xlu1 %1185  ;;  %v1224_v47 = vmul.f32 %v1191_v46, %v2208_v61 }
 0x139   : > { %v1656_v45 = vpack.c.bf16 %v965_v9, %v964_v24  ;;  %v1217_v8 = vmul.f32 %v1156_v60, %v965_v9  ;;  %v1281_v24 = vmul.f32 %v1220_v29, %v1220_v29  ;;  %v1222_v9 = vmul.f32 %v1181_v31, %v2198_v41 }
 0x13a   : > { %v1223_v21 = vmul.f32 %v1186_v35, %v2200_v42 }
 0x13b   : > { %1686 = vst [vmem:[%s2142_s5 + $0x48] sm:$0xff] %v1656_v45   ;;  %v1278_v50 = vmul.f32 %v1217_v8, %v1217_v8  ;;  %v1244_v18 = vadd.f32 %v1243_v25, %v1217_v8  ;;  %v1283_v36 = vmul.f32 %v1222_v9, %v1222_v9 }
 0x13c   : > { %v1284_v17 = vmul.f32 %v1223_v21, %v1223_v21 }
 0x13d   : > { %v1305_v34 = vadd.f32 %v1304_v16, %v1278_v50 }
 0x13e   : > { %v926_v56 = vpop.f32.mrf.mxu2 }
 0x13f   : > { %v966_v59 = vadd.f32 %v926_v56, %v724_v2  ;;  %v526_v11 = vpop.f32.mrf.mxu0  ;;  %v1225_v2 = vmul.f32 %v1196_v53, %v2210_v0 }
 0x140   : > { %v726_v51 = vadd.f32 %v725_v62, %v526_v11 }
 0x141   : > { %v1218_v63 = vmul.f32 %v1161_v15, %v966_v59  ;;  %v1286_v54 = vmul.f32 %v1225_v2, %v1225_v2 }
 0x143   : > { %v1279_v19 = vmul.f32 %v1218_v63, %v1218_v63  ;;  %v1245_v27 = vadd.f32 %v1244_v18, %v1218_v63 }
 0x145   : > { %v1306_v14 = vadd.f32 %v1305_v34, %v1279_v19 }
 0x146   : > { %v928_v26 = vpop.f32.mrf.mxu2 }
 0x147   : > { %v967_v10 = vadd.f32 %v928_v26, %v726_v51 }
 0x149   : > { %v1661_v37 = vpack.c.bf16 %v967_v10, %v966_v59  ;;  %v1219_v49 = vmul.f32 %v1166_v44, %v967_v10  ;;  %v1285_v44 = vmul.f32 %v1224_v47, %v1224_v47 }
 0x14b   : > { %1687 = vst [vmem:[%s2142_s5 + $0x50] sm:$0xff] %v1661_v37   ;;  %v1246_v22 = vadd.f32 %v1245_v27, %v1219_v49  ;;  %v1280_v20 = vmul.f32 %v1219_v49, %v1219_v49 }
 0x14d   : > { %v1247_v38 = vadd.f32 %v1246_v22, %v1220_v29  ;;  %v1307_v30 = vadd.f32 %v1306_v14, %v1280_v20 }
 0x14f   : > { %v1248_v43 = vadd.f32 %v1247_v38, %v1221_v1  ;;  %v1308_v45 = vadd.f32 %v1307_v30, %v1281_v24 }
 0x151   : > { %v1249_v28 = vadd.f32 %v1248_v43, %v1222_v9  ;;  %v1309_v60 = vadd.f32 %v1308_v45, %v1282_v40 }
 0x153   : > { %v1250_v33 = vadd.f32 %v1249_v28, %v1223_v21  ;;  %v1310_v41 = vadd.f32 %v1309_v60, %v1283_v36 }
 0x155   : > { %v1251_v39 = vadd.f32 %v1250_v33, %v1224_v47  ;;  %v1311_v48 = vadd.f32 %v1310_v41, %v1284_v17 }
 0x157   : > { %v1252_v42 = vadd.f32 %v1251_v39, %v1225_v2  ;;  %v1312_v15 = vadd.f32 %v1311_v48, %v1285_v44 }
 0x159   : > { %v1253_v55 = vrot.slane %v1252_v42, 4  ;;  %v1313_v56 = vadd.f32 %v1312_v15, %v1286_v54 }
 0x15b   : > { %v1254_v57 = vadd.f32 %v1253_v55, %v1252_v42  ;;  %v1314_v58 = vrot.slane %v1313_v56, 4 }
 0x15d   : > { %v1255_v61 = vrot.slane %v1254_v57, 2  ;;  %v1315_v52 = vadd.f32 %v1314_v58, %v1313_v56 }
 0x15f   : > { %v1256_v59 = vadd.f32 %v1255_v61, %v1254_v57  ;;  %v1316_v3 = vrot.slane %v1315_v52, 2 }
 0x161   : > { %v1257_v4 = vrot.slane %v1256_v59, 1  ;;  %v1317_v5 = vadd.f32 %v1316_v3, %v1315_v52 }
 0x163   : > { %v1318_v0 = vrot.slane %v1317_v5, 1  ;;  %v1258_v8 = vadd.f32 %v1257_v4, %v1256_v59 }
 0x165   : > { %v1319_v11 = vadd.f32 %v1318_v0, %v1317_v5 }
 0x167   : > { %v1321_v12 = vsel %vm1320_vm4, %v1258_v8, %v1319_v11 }
 0x168   : > { %1322 = vst [vmem:[%s277_s8] sm:$0x3] %v1321_v12 }
 0x169 PF: > { %s15_s17 = sadd.s32 1, %s1745_s17   ;;  %s2246_s15 = smov %s1741_s16 }
 0x16a   : > { %p12_p5 = scmp.ge.s32.totalorder %s15_s17, 4   ;;  %s2247_s16 = smov %s2249_s18 }
 0x16c   :  { %14 = sbr.rel (!%p12_p5) target bundleno = 2 (0x2), region = 79 }

</bundles_post_ra>
